<compile_context>
chip_gen: v7x
topology: tpu7x:2x2x1
jax: 0.10.0
libtpu: 0.0.40
codegen_flags: <defaults>
</compile_context>

<pallas_src>
import functools

import jax
import jax.numpy as jnp
from jax.experimental import pallas as pl
from jax.experimental.pallas import tpu as pltpu

# ---- small, module-consistent sizes -------------------------------------
D_MODEL = 32
NHEAD = 4
DIM_FF = 64
SEQ = 8
BATCH = 2
LN_EPS = 1e-5


def _layer_norm(x, g, b):
    mu = jnp.mean(x, axis=-1, keepdims=True)
    var = jnp.mean((x - mu) ** 2, axis=-1, keepdims=True)
    return (x - mu) * jax.lax.rsqrt(var + LN_EPS) * g + b


def _encoder_layer_kernel(
    x_ref,             # (S*B, D)   all rows, (seq, batch)-interleaved
    mask_ref,          # (S*B, S*B) 0/1 same-batch-element mask for attention
    wqkv_ref, bqkv_ref,  # (D, 3D), (1, 3D)   fused in-proj (scale folded into Q part)
    wo_ref, bo_ref,      # (D, D),  (1, D)    out_proj.weight^T / bias
    w1_ref, b1_ref,      # (D, F),  (1, F)    linear1.weight^T / bias
    w2_ref, b2_ref,      # (F, D),  (1, D)    linear2.weight^T / bias
    g1_ref, be1_ref,     # (1, D)             norm1
    g2_ref, be2_ref,     # (1, D)             norm2
    o_ref,               # (S*B, D)
    *,
    nhead: int,
):
    f32 = jnp.float32
    rows, d = x_ref.shape
    dh = d // nhead

    x = x_ref[...].astype(f32)                                        # (rows, D)

    # One fused QKV projection: (rows, D) x (D, 3D).  1/sqrt(dh) is pre-folded
    # into the Q columns of both the weight and the bias.
    qkv = jnp.dot(x, wqkv_ref[...], preferred_element_type=f32) + bqkv_ref[...]

    # Split into heads via static lane slices stacked on a leading head axis
    # (no per-head matmuls, no minor-dim reshapes).
    def head_stack(off):
        return jnp.stack(
            [qkv[:, off + h * dh: off + (h + 1) * dh] for h in range(nhead)],
            axis=0)                                                   # (H, rows, dh)

    q = head_stack(0)
    k = head_stack(d)
    v = head_stack(2 * d)

    # Scaled dot-product attention over all rows; cross-batch-element columns are
    # zeroed with the 0/1 mask (softmax is shift-invariant, so masking after exp
    # and normalizing over the masked sum is exact).
    s = jnp.einsum('hqe,hke->hqk', q, k, preferred_element_type=f32)  # (H, rows, rows)
    s = s - jnp.max(s, axis=-1, keepdims=True)
    p = jnp.exp(s) * mask_ref[...][None]
    p = p / jnp.sum(p, axis=-1, keepdims=True)                        # exact normalizer
    attn = jnp.einsum('hqk,hke->hqe', p, v, preferred_element_type=f32)  # (H, rows, dh)

    # Head-concat folded into a single out-projection matmul.
    attn = jnp.concatenate([attn[h] for h in range(nhead)], axis=-1)  # (rows, D)
    attn_out = jnp.dot(attn, wo_ref[...], preferred_element_type=f32) + bo_ref[...]

    # residual + LayerNorm 1 (post-norm); dropout1 == identity (eval)
    s1 = _layer_norm(x + attn_out, g1_ref[...], be1_ref[...])

    # feed-forward: linear1 -> relu -> linear2 (inner dropout == identity)
    h1 = jnp.maximum(
        jnp.dot(s1, w1_ref[...], preferred_element_type=f32) + b1_ref[...], 0.0)
    ffn = jnp.dot(h1, w2_ref[...], preferred_element_type=f32) + b2_ref[...]

    # residual + LayerNorm 2; dropout2 == identity (eval)
    out = _layer_norm(s1 + ffn, g2_ref[...], be2_ref[...])
    o_ref[...] = out.astype(o_ref.dtype)


def prepare_params(p):
    """One-time repack of PyTorch-layout params into kernel-friendly layouts."""
    D = D_MODEL
    dh = D // NHEAD
    scale = 1.0 / (dh ** 0.5)

    in_w = p["in_w"]                          # (3D, D) PyTorch (out, in)
    in_b = p["in_b"].reshape(3 * D)           # (3D,)

    # Fused, pre-transposed QKV weight; fold the attention scale into BOTH the Q
    # weight columns and the Q bias (PyTorch scales q after the biased in-proj).
    wq = jnp.transpose(in_w[:D]) * scale
    wk = jnp.transpose(in_w[D:2 * D])
    wv = jnp.transpose(in_w[2 * D:])
    wqkv = jnp.concatenate([wq, wk, wv], axis=1)                        # (D, 3D)
    bqkv = jnp.concatenate(
        [in_b[:D] * scale, in_b[D:2 * D], in_b[2 * D:]]).reshape(1, 3 * D)

    return dict(
        wqkv=wqkv, bqkv=bqkv,
        wo=jnp.transpose(p["out_w"]), bo=p["out_b"],
        w1=jnp.transpose(p["w1"]), b1=p["b1"],
        w2=jnp.transpose(p["w2"]), b2=p["b2"],
        g1=p["g1"], be1=p["be1"], g2=p["g2"], be2=p["be2"],
    )


def transformer_encoder_layer(src_sbd, kp):
    """src_sbd: (S, B, D) float32 (PyTorch MHA layout). kp: prepare_params(...)."""
    S, B, D = src_sbd.shape
    rows = S * B
    x2d = src_sbd.reshape(rows, D)            # layout-preserving reshape (free)

    # 0/1 mask: flattened row r belongs to batch element r % B; keys from other
    # batch elements are masked out of the softmax.
    bid = jnp.arange(rows, dtype=jnp.int32) % B
    mask01 = (bid[:, None] == bid[None, :]).astype(jnp.float32)        # (rows, rows)

    args = (x2d, mask01,
            kp["wqkv"], kp["bqkv"], kp["wo"], kp["bo"],
            kp["w1"], kp["b1"], kp["w2"], kp["b2"],
            kp["g1"], kp["be1"], kp["g2"], kp["be2"])

    vmem = pl.BlockSpec(memory_space=pltpu.MemorySpace.VMEM)
    kernel = functools.partial(_encoder_layer_kernel, nhead=NHEAD)
    out2d = pl.pallas_call(
        kernel,
        out_shape=jax.ShapeDtypeStruct((rows, D), jnp.float32),
        in_specs=[vmem] * len(args),
        out_specs=vmem,
    )(*args)
    return out2d.reshape(S, B, D)             # layout-preserving reshape (free)


def reference_encoder_layer(src_sbd, params):
    """Pure-JAX reference with identical math (eval-mode PyTorch semantics)."""
    S, B, D = src_sbd.shape
    dh = D // NHEAD
    x = jnp.transpose(src_sbd, (1, 0, 2))        # (B, S, D)

    qkv = jnp.einsum('bsd,ed->bse', x, params["in_w"]) + params["in_b"]
    q = qkv[..., :D] / jnp.sqrt(dh)
    k = qkv[..., D:2 * D]
    v = qkv[..., 2 * D:]

    def split_heads(t):
        return t.reshape(B, S, NHEAD, dh).transpose(0, 2, 1, 3)  # (B, H, S, dh)

    qh, kh, vh = split_heads(q), split_heads(k), split_heads(v)
    scores = jnp.einsum('bhqd,bhkd->bhqk', qh, kh)
    p = jax.nn.softmax(scores, axis=-1)
    attn = jnp.einsum('bhqk,bhkd->bhqd', p, vh)
    attn = attn.transpose(0, 2, 1, 3).reshape(B, S, D)
    attn_out = jnp.einsum('bsd,ed->bse', attn, params["out_w"]) + params["out_b"]

    def layer_norm(t, g, b):
        mu = t.mean(-1, keepdims=True)
        var = ((t - mu) ** 2).mean(-1, keepdims=True)
        return (t - mu) / jnp.sqrt(var + LN_EPS) * g + b

    src = layer_norm(x + attn_out, params["g1"], params["be1"])
    h1 = jnp.maximum(jnp.einsum('bsd,fd->bsf', src, params["w1"]) + params["b1"], 0.0)
    ffn = jnp.einsum('bsf,df->bsd', h1, params["w2"]) + params["b2"]
    out = layer_norm(src + ffn, params["g2"], params["be2"])
    return jnp.transpose(out, (1, 0, 2))


def init_params(key):
    ks = jax.random.split(key, 8)
    s = 0.05
    return {
        "in_w":  jax.random.normal(ks[0], (3 * D_MODEL, D_MODEL), jnp.float32) * s,
        "in_b":  jax.random.normal(ks[1], (1, 3 * D_MODEL), jnp.float32) * s,
        "out_w": jax.random.normal(ks[2], (D_MODEL, D_MODEL), jnp.float32) * s,
        "out_b": jax.random.normal(ks[3], (1, D_MODEL), jnp.float32) * s,
        "w1":    jax.random.normal(ks[4], (DIM_FF, D_MODEL), jnp.float32) * s,
        "b1":    jax.random.normal(ks[5], (1, DIM_FF), jnp.float32) * s,
        "w2":    jax.random.normal(ks[6], (D_MODEL, DIM_FF), jnp.float32) * s,
        "b2":    jax.random.normal(ks[7], (1, D_MODEL), jnp.float32) * s,
        "g1":    jnp.ones((1, D_MODEL), jnp.float32),
        "be1":   jnp.zeros((1, D_MODEL), jnp.float32),
        "g2":    jnp.ones((1, D_MODEL), jnp.float32),
        "be2":   jnp.zeros((1, D_MODEL), jnp.float32),
    }


if __name__ == "__main__":
    key = jax.random.PRNGKey(0)
    k_x, k_p = jax.random.split(key)
    # PyTorch MHA default layout: (seq, batch, d_model)
    src = jax.random.normal(k_x, (SEQ, BATCH, D_MODEL), jnp.float32)
    params = init_params(k_p)
    kparams = prepare_params(params)      # one-time weight repack (outside the kernel)

    out = transformer_encoder_layer(src, kparams)
    out = jax.block_until_ready(out)

    ref = reference_encoder_layer(src, params)
    assert out.shape == (SEQ, BATCH, D_MODEL)
    # exact softmax normalizer -> tight tolerance vs. the pure-JAX reference
    assert jnp.allclose(out, ref, atol=1e-4, rtol=1e-4), "mismatch vs JAX reference"

    print("KERNEL_OK")
</pallas_src>

<mosaic_0001>
module attributes {stable_mosaic.version = 11 : i64} {
  func.func @_encoder_layer_kernel(%arg0: memref<16x32xf32, #tpu.memory_space<vmem>>, %arg1: memref<16x16xf32, #tpu.memory_space<vmem>>, %arg2: memref<32x96xf32, #tpu.memory_space<vmem>>, %arg3: memref<1x96xf32, #tpu.memory_space<vmem>>, %arg4: memref<32x32xf32, #tpu.memory_space<vmem>>, %arg5: memref<1x32xf32, #tpu.memory_space<vmem>>, %arg6: memref<32x64xf32, #tpu.memory_space<vmem>>, %arg7: memref<1x64xf32, #tpu.memory_space<vmem>>, %arg8: memref<64x32xf32, #tpu.memory_space<vmem>>, %arg9: memref<1x32xf32, #tpu.memory_space<vmem>>, %arg10: memref<1x32xf32, #tpu.memory_space<vmem>>, %arg11: memref<1x32xf32, #tpu.memory_space<vmem>>, %arg12: memref<1x32xf32, #tpu.memory_space<vmem>>, %arg13: memref<1x32xf32, #tpu.memory_space<vmem>>, %arg14: memref<16x32xf32, #tpu.memory_space<vmem>>) attributes {dimension_semantics = [], scalar_prefetch = 0 : i64, scratch_operands = 0 : i64, tpu.core_type = #tpu.core_type<tc>} {
    %c0 = arith.constant 0 : index
    %c0_0 = arith.constant 0 : index
    %0 = vector.load %arg0[%c0, %c0_0] : memref<16x32xf32, #tpu.memory_space<vmem>>, vector<16x32xf32>
    %c0_1 = arith.constant 0 : index
    %c0_2 = arith.constant 0 : index
    %1 = vector.load %arg2[%c0_1, %c0_2] : memref<32x96xf32, #tpu.memory_space<vmem>>, vector<32x96xf32>
    %cst = arith.constant dense<0.000000e+00> : vector<16x96xf32>
    %2 = tpu.matmul %0, %1, %cst {dimension_numbers = #tpu.dot_dimension_numbers<[1], [0], [0], [1], [0, 0, 1, 1], [], []>} : vector<16x32xf32>, vector<32x96xf32>, vector<16x96xf32> -> vector<16x96xf32>
    %c0_3 = arith.constant 0 : index
    %c0_4 = arith.constant 0 : index
    %3 = vector.load %arg3[%c0_3, %c0_4] : memref<1x96xf32, #tpu.memory_space<vmem>>, vector<1x96xf32>
    %4 = vector.broadcast %3 : vector<1x96xf32> to vector<16x96xf32>
    %5 = arith.addf %2, %4 : vector<16x96xf32>
    %6 = vector.extract_strided_slice %5 {offsets = [0, 0], sizes = [16, 8], strides = [1, 1]} : vector<16x96xf32> to vector<16x8xf32>
    %7 = vector.extract_strided_slice %5 {offsets = [0, 8], sizes = [16, 8], strides = [1, 1]} : vector<16x96xf32> to vector<16x8xf32>
    %8 = vector.extract_strided_slice %5 {offsets = [0, 16], sizes = [16, 8], strides = [1, 1]} : vector<16x96xf32> to vector<16x8xf32>
    %9 = vector.extract_strided_slice %5 {offsets = [0, 24], sizes = [16, 8], strides = [1, 1]} : vector<16x96xf32> to vector<16x8xf32>
    %10 = vector.shape_cast %6 : vector<16x8xf32> to vector<1x16x8xf32>
    %11 = vector.shape_cast %7 : vector<16x8xf32> to vector<1x16x8xf32>
    %12 = vector.shape_cast %8 : vector<16x8xf32> to vector<1x16x8xf32>
    %13 = vector.shape_cast %9 : vector<16x8xf32> to vector<1x16x8xf32>
    %14 = tpu.concatenate %10, %11, %12, %13 in 0 : vector<1x16x8xf32>, vector<1x16x8xf32>, vector<1x16x8xf32>, vector<1x16x8xf32> -> vector<4x16x8xf32>
    %15 = vector.extract_strided_slice %5 {offsets = [0, 32], sizes = [16, 8], strides = [1, 1]} : vector<16x96xf32> to vector<16x8xf32>
    %16 = vector.extract_strided_slice %5 {offsets = [0, 40], sizes = [16, 8], strides = [1, 1]} : vector<16x96xf32> to vector<16x8xf32>
    %17 = vector.extract_strided_slice %5 {offsets = [0, 48], sizes = [16, 8], strides = [1, 1]} : vector<16x96xf32> to vector<16x8xf32>
    %18 = vector.extract_strided_slice %5 {offsets = [0, 56], sizes = [16, 8], strides = [1, 1]} : vector<16x96xf32> to vector<16x8xf32>
    %19 = vector.shape_cast %15 : vector<16x8xf32> to vector<1x16x8xf32>
    %20 = vector.shape_cast %16 : vector<16x8xf32> to vector<1x16x8xf32>
    %21 = vector.shape_cast %17 : vector<16x8xf32> to vector<1x16x8xf32>
    %22 = vector.shape_cast %18 : vector<16x8xf32> to vector<1x16x8xf32>
    %23 = tpu.concatenate %19, %20, %21, %22 in 0 : vector<1x16x8xf32>, vector<1x16x8xf32>, vector<1x16x8xf32>, vector<1x16x8xf32> -> vector<4x16x8xf32>
    %24 = vector.extract_strided_slice %5 {offsets = [0, 64], sizes = [16, 8], strides = [1, 1]} : vector<16x96xf32> to vector<16x8xf32>
    %25 = vector.extract_strided_slice %5 {offsets = [0, 72], sizes = [16, 8], strides = [1, 1]} : vector<16x96xf32> to vector<16x8xf32>
    %26 = vector.extract_strided_slice %5 {offsets = [0, 80], sizes = [16, 8], strides = [1, 1]} : vector<16x96xf32> to vector<16x8xf32>
    %27 = vector.extract_strided_slice %5 {offsets = [0, 88], sizes = [16, 8], strides = [1, 1]} : vector<16x96xf32> to vector<16x8xf32>
    %28 = vector.shape_cast %24 : vector<16x8xf32> to vector<1x16x8xf32>
    %29 = vector.shape_cast %25 : vector<16x8xf32> to vector<1x16x8xf32>
    %30 = vector.shape_cast %26 : vector<16x8xf32> to vector<1x16x8xf32>
    %31 = vector.shape_cast %27 : vector<16x8xf32> to vector<1x16x8xf32>
    %32 = tpu.concatenate %28, %29, %30, %31 in 0 : vector<1x16x8xf32>, vector<1x16x8xf32>, vector<1x16x8xf32>, vector<1x16x8xf32> -> vector<4x16x8xf32>
    "tpu.trace_start"() <{level = 10 : i32, message = "hqe,hke->hqk"}> : () -> ()
    %cst_5 = arith.constant dense<0.000000e+00> : vector<4x16x16xf32>
    %33 = tpu.matmul %14, %23, %cst_5 {dimension_numbers = #tpu.dot_dimension_numbers<[2], [2], [1], [1], [0, 0, 0, 1, 1, 1], [0], [0]>} : vector<4x16x8xf32>, vector<4x16x8xf32>, vector<4x16x16xf32> -> vector<4x16x16xf32>
    "tpu.trace_stop"() : () -> ()
    %cst_6 = arith.constant dense<0xFF800000> : vector<4x16xf32>
    %34 = vector.multi_reduction <maximumf>, %33, %cst_6 [2] : vector<4x16x16xf32> to vector<4x16xf32>
    %35 = vector.shape_cast %34 : vector<4x16xf32> to vector<4x16x1xf32>
    %36 = vector.broadcast %35 : vector<4x16x1xf32> to vector<4x16x16xf32>
    %37 = arith.subf %33, %36 : vector<4x16x16xf32>
    %38 = math.exp %37 : vector<4x16x16xf32>
    %c0_7 = arith.constant 0 : index
    %c0_8 = arith.constant 0 : index
    %39 = vector.load %arg1[%c0_7, %c0_8] : memref<16x16xf32, #tpu.memory_space<vmem>>, vector<16x16xf32>
    %40 = vector.shape_cast %39 : vector<16x16xf32> to vector<1x16x16xf32>
    %41 = vector.broadcast %40 : vector<1x16x16xf32> to vector<4x16x16xf32>
    %42 = arith.mulf %38, %41 : vector<4x16x16xf32>
    %cst_9 = arith.constant dense<0.000000e+00> : vector<4x16xf32>
    %43 = vector.multi_reduction <add>, %42, %cst_9 [2] : vector<4x16x16xf32> to vector<4x16xf32>
    %44 = vector.shape_cast %43 : vector<4x16xf32> to vector<4x16x1xf32>
    %45 = vector.broadcast %44 : vector<4x16x1xf32> to vector<4x16x16xf32>
    %46 = arith.divf %42, %45 : vector<4x16x16xf32>
    "tpu.trace_start"() <{level = 10 : i32, message = "hqk,hke->hqe"}> : () -> ()
    %cst_10 = arith.constant dense<0.000000e+00> : vector<4x16x8xf32>
    %47 = tpu.matmul %46, %32, %cst_10 {dimension_numbers = #tpu.dot_dimension_numbers<[2], [1], [1], [2], [0, 0, 0, 1, 1, 2], [0], [0]>} : vector<4x16x16xf32>, vector<4x16x8xf32>, vector<4x16x8xf32> -> vector<4x16x8xf32>
    "tpu.trace_stop"() : () -> ()
    %48 = vector.extract_strided_slice %47 {offsets = [0, 0, 0], sizes = [1, 16, 8], strides = [1, 1, 1]} : vector<4x16x8xf32> to vector<1x16x8xf32>
    %49 = vector.shape_cast %48 : vector<1x16x8xf32> to vector<16x8xf32>
    %50 = vector.extract_strided_slice %47 {offsets = [1, 0, 0], sizes = [1, 16, 8], strides = [1, 1, 1]} : vector<4x16x8xf32> to vector<1x16x8xf32>
    %51 = vector.shape_cast %50 : vector<1x16x8xf32> to vector<16x8xf32>
    %52 = vector.extract_strided_slice %47 {offsets = [2, 0, 0], sizes = [1, 16, 8], strides = [1, 1, 1]} : vector<4x16x8xf32> to vector<1x16x8xf32>
    %53 = vector.shape_cast %52 : vector<1x16x8xf32> to vector<16x8xf32>
    %54 = vector.extract_strided_slice %47 {offsets = [3, 0, 0], sizes = [1, 16, 8], strides = [1, 1, 1]} : vector<4x16x8xf32> to vector<1x16x8xf32>
    %55 = vector.shape_cast %54 : vector<1x16x8xf32> to vector<16x8xf32>
    %56 = tpu.concatenate %49, %51, %53, %55 in 1 : vector<16x8xf32>, vector<16x8xf32>, vector<16x8xf32>, vector<16x8xf32> -> vector<16x32xf32>
    %c0_11 = arith.constant 0 : index
    %c0_12 = arith.constant 0 : index
    %57 = vector.load %arg4[%c0_11, %c0_12] : memref<32x32xf32, #tpu.memory_space<vmem>>, vector<32x32xf32>
    %cst_13 = arith.constant dense<0.000000e+00> : vector<16x32xf32>
    %58 = tpu.matmul %56, %57, %cst_13 {dimension_numbers = #tpu.dot_dimension_numbers<[1], [0], [0], [1], [0, 0, 1, 1], [], []>} : vector<16x32xf32>, vector<32x32xf32>, vector<16x32xf32> -> vector<16x32xf32>
    %c0_14 = arith.constant 0 : index
    %c0_15 = arith.constant 0 : index
    %59 = vector.load %arg5[%c0_14, %c0_15] : memref<1x32xf32, #tpu.memory_space<vmem>>, vector<1x32xf32>
    %60 = vector.broadcast %59 : vector<1x32xf32> to vector<16x32xf32>
    %61 = arith.addf %58, %60 : vector<16x32xf32>
    %62 = arith.addf %0, %61 : vector<16x32xf32>
    %c0_16 = arith.constant 0 : index
    %c0_17 = arith.constant 0 : index
    %63 = vector.load %arg10[%c0_16, %c0_17] : memref<1x32xf32, #tpu.memory_space<vmem>>, vector<1x32xf32>
    %c0_18 = arith.constant 0 : index
    %c0_19 = arith.constant 0 : index
    %64 = vector.load %arg11[%c0_18, %c0_19] : memref<1x32xf32, #tpu.memory_space<vmem>>, vector<1x32xf32>
    %cst_20 = arith.constant dense<0.000000e+00> : vector<16xf32>
    %65 = vector.multi_reduction <add>, %62, %cst_20 [1] : vector<16x32xf32> to vector<16xf32>
    %66 = vector.shape_cast %65 : vector<16xf32> to vector<16x1xf32>
    %cst_21 = arith.constant 3.200000e+01 : f32
    %67 = vector.broadcast %cst_21 : f32 to vector<16x1xf32>
    %68 = arith.divf %66, %67 : vector<16x1xf32>
    %69 = vector.broadcast %68 : vector<16x1xf32> to vector<16x32xf32>
    %70 = arith.subf %62, %69 : vector<16x32xf32>
    %71 = arith.mulf %70, %70 : vector<16x32xf32>
    %cst_22 = arith.constant dense<0.000000e+00> : vector<16xf32>
    %72 = vector.multi_reduction <add>, %71, %cst_22 [1] : vector<16x32xf32> to vector<16xf32>
    %73 = vector.shape_cast %72 : vector<16xf32> to vector<16x1xf32>
    %cst_23 = arith.constant 3.200000e+01 : f32
    %74 = vector.broadcast %cst_23 : f32 to vector<16x1xf32>
    %75 = arith.divf %73, %74 : vector<16x1xf32>
    %76 = vector.broadcast %68 : vector<16x1xf32> to vector<16x32xf32>
    %77 = arith.subf %62, %76 : vector<16x32xf32>
    %cst_24 = arith.constant 9.99999974E-6 : f32
    %78 = vector.broadcast %cst_24 : f32 to vector<16x1xf32>
    %79 = arith.addf %75, %78 : vector<16x1xf32>
    %80 = math.rsqrt %79 : vector<16x1xf32>
    %81 = vector.broadcast %80 : vector<16x1xf32> to vector<16x32xf32>
    %82 = arith.mulf %77, %81 : vector<16x32xf32>
    %83 = vector.broadcast %63 : vector<1x32xf32> to vector<16x32xf32>
    %84 = arith.mulf %82, %83 : vector<16x32xf32>
    %85 = vector.broadcast %64 : vector<1x32xf32> to vector<16x32xf32>
    %86 = arith.addf %84, %85 : vector<16x32xf32>
    %c0_25 = arith.constant 0 : index
    %c0_26 = arith.constant 0 : index
    %87 = vector.load %arg6[%c0_25, %c0_26] : memref<32x64xf32, #tpu.memory_space<vmem>>, vector<32x64xf32>
    %cst_27 = arith.constant dense<0.000000e+00> : vector<16x64xf32>
    %88 = tpu.matmul %86, %87, %cst_27 {dimension_numbers = #tpu.dot_dimension_numbers<[1], [0], [0], [1], [0, 0, 1, 1], [], []>} : vector<16x32xf32>, vector<32x64xf32>, vector<16x64xf32> -> vector<16x64xf32>
    %c0_28 = arith.constant 0 : index
    %c0_29 = arith.constant 0 : index
    %89 = vector.load %arg7[%c0_28, %c0_29] : memref<1x64xf32, #tpu.memory_space<vmem>>, vector<1x64xf32>
    %90 = vector.broadcast %89 : vector<1x64xf32> to vector<16x64xf32>
    %91 = arith.addf %88, %90 : vector<16x64xf32>
    %cst_30 = arith.constant 0.000000e+00 : f32
    %92 = vector.broadcast %cst_30 : f32 to vector<16x64xf32>
    %93 = arith.maximumf %91, %92 : vector<16x64xf32>
    %c0_31 = arith.constant 0 : index
    %c0_32 = arith.constant 0 : index
    %94 = vector.load %arg8[%c0_31, %c0_32] : memref<64x32xf32, #tpu.memory_space<vmem>>, vector<64x32xf32>
    %cst_33 = arith.constant dense<0.000000e+00> : vector<16x32xf32>
    %95 = tpu.matmul %93, %94, %cst_33 {dimension_numbers = #tpu.dot_dimension_numbers<[1], [0], [0], [1], [0, 0, 1, 1], [], []>} : vector<16x64xf32>, vector<64x32xf32>, vector<16x32xf32> -> vector<16x32xf32>
    %c0_34 = arith.constant 0 : index
    %c0_35 = arith.constant 0 : index
    %96 = vector.load %arg9[%c0_34, %c0_35] : memref<1x32xf32, #tpu.memory_space<vmem>>, vector<1x32xf32>
    %97 = vector.broadcast %96 : vector<1x32xf32> to vector<16x32xf32>
    %98 = arith.addf %95, %97 : vector<16x32xf32>
    %99 = arith.addf %86, %98 : vector<16x32xf32>
    %c0_36 = arith.constant 0 : index
    %c0_37 = arith.constant 0 : index
    %100 = vector.load %arg12[%c0_36, %c0_37] : memref<1x32xf32, #tpu.memory_space<vmem>>, vector<1x32xf32>
    %c0_38 = arith.constant 0 : index
    %c0_39 = arith.constant 0 : index
    %101 = vector.load %arg13[%c0_38, %c0_39] : memref<1x32xf32, #tpu.memory_space<vmem>>, vector<1x32xf32>
    %cst_40 = arith.constant dense<0.000000e+00> : vector<16xf32>
    %102 = vector.multi_reduction <add>, %99, %cst_40 [1] : vector<16x32xf32> to vector<16xf32>
    %103 = vector.shape_cast %102 : vector<16xf32> to vector<16x1xf32>
    %cst_41 = arith.constant 3.200000e+01 : f32
    %104 = vector.broadcast %cst_41 : f32 to vector<16x1xf32>
    %105 = arith.divf %103, %104 : vector<16x1xf32>
    %106 = vector.broadcast %105 : vector<16x1xf32> to vector<16x32xf32>
    %107 = arith.subf %99, %106 : vector<16x32xf32>
    %108 = arith.mulf %107, %107 : vector<16x32xf32>
    %cst_42 = arith.constant dense<0.000000e+00> : vector<16xf32>
    %109 = vector.multi_reduction <add>, %108, %cst_42 [1] : vector<16x32xf32> to vector<16xf32>
    %110 = vector.shape_cast %109 : vector<16xf32> to vector<16x1xf32>
    %cst_43 = arith.constant 3.200000e+01 : f32
    %111 = vector.broadcast %cst_43 : f32 to vector<16x1xf32>
    %112 = arith.divf %110, %111 : vector<16x1xf32>
    %113 = vector.broadcast %105 : vector<16x1xf32> to vector<16x32xf32>
    %114 = arith.subf %99, %113 : vector<16x32xf32>
    %cst_44 = arith.constant 9.99999974E-6 : f32
    %115 = vector.broadcast %cst_44 : f32 to vector<16x1xf32>
    %116 = arith.addf %112, %115 : vector<16x1xf32>
    %117 = math.rsqrt %116 : vector<16x1xf32>
    %118 = vector.broadcast %117 : vector<16x1xf32> to vector<16x32xf32>
    %119 = arith.mulf %114, %118 : vector<16x32xf32>
    %120 = vector.broadcast %100 : vector<1x32xf32> to vector<16x32xf32>
    %121 = arith.mulf %119, %120 : vector<16x32xf32>
    %122 = vector.broadcast %101 : vector<1x32xf32> to vector<16x32xf32>
    %123 = arith.addf %121, %122 : vector<16x32xf32>
    %c0_45 = arith.constant 0 : index
    %c0_46 = arith.constant 0 : index
    %124 = vector.load %arg14[%c0_45, %c0_46] : memref<16x32xf32, #tpu.memory_space<vmem>>, vector<16x32xf32>
    tpu.vector_store %arg14[%c0_45, %c0_46], %123 {strides = array<i32>} : memref<16x32xf32, #tpu.memory_space<vmem>>, vector<16x32xf32>,
    return
  }
}

</mosaic_0001>

<bundles_post_ra>
// kernel: tpu_custom_call.1
= control target key start
LH: loop header
LB: loop body
LE: loop exit
PB: predicated region body
PF: predicated region fallthrough
CT: control target
= control target key end

     0   :  { %19 = vsyncpa [#allocation3], 0  ;;  %s2202_s0 = inlined_call_operand.hbm [shape: f32[16,32], index: 0, kind: input, shape index: {}]   ;;  %s2203_s1 = inlined_call_operand.hbm [shape: f32[16,16], index: 1, kind: input, shape index: {}]   ;;  %s2204_s2 = inlined_call_operand.vmem [shape: f32[32,96], index: 2, kind: input, shape index: {}]   ;;  %s2205_s3 = inlined_call_operand.vmem [shape: f32[1,96], index: 3, kind: input, shape index: {}]   ;;  %s2206_s4 = inlined_call_operand.vmem [shape: f32[32,32], index: 4, kind: input, shape index: {}]   ;;  %s2207_s5 = inlined_call_operand.vmem [shape: f32[1,32], index: 5, kind: input, shape index: {}]   ;;  %s2208_s6 = inlined_call_operand.vmem [shape: f32[32,64], index: 6, kind: input, shape index: {}]   ;;  %s2209_s7 = inlined_call_operand.vmem [shape: f32[1,64], index: 7, kind: input, shape index: {}]   ;;  %s2210_s8 = inlined_call_operand.vmem [shape: f32[64,32], index: 8, kind: input, shape index: {}]   ;;  %s2211_s9 = inlined_call_operand.vmem [shape: f32[1,32], index: 9, kind: input, shape index: {}]   ;;  %s2212_s10 = inlined_call_operand.vmem [shape: f32[1,32], index: 10, kind: input, shape index: {}]   ;;  %s2213_s11 = inlined_call_operand.vmem [shape: f32[1,32], index: 11, kind: input, shape index: {}]   ;;  %s2214_s12 = inlined_call_operand.vmem [shape: f32[1,32], index: 12, kind: input, shape index: {}]   ;;  %s2215_s13 = inlined_call_operand.vmem [shape: f32[1,32], index: 13, kind: input, shape index: {}]   ;;  %s2216_s14 = inlined_call_operand.hbm [shape: f32[16,32], index: 14, kind: output, shape index: {}]  }
   0x1   :  { %20 = vsyncpa [#allocation6], 0 }
   0x2   :  { %21 = vsyncpa [#allocation4], 0  ;;  %s1860_s29 = smov [#allocation2]   ;;  %s1788_s17 = scalar_lea.hbm %s2202_s0, 256 }
   0x3   :  { %s27_s30 = sshll.u32 %s1860_s29, 4  ;;  %p1789_p0 = scmp.ne.s32.totalorder %s2202_s0, %s1788_s17  ;;  %s28_s30 = int_to_ptr.vmem [resolvable:$true] %s27_s30 }
   0x4   :  { %p1792_p1 = scmp.lt.u32.totalorder %s1788_s17, %s2202_s0 }
   0x6   :  { %p1794_p2 = pnand %p1792_p1, %p1789_p0 }
   0x8   :  { %1797 = shalt.err (!%p1794_p2)
}
   0x9   :  { %s1798_s22 = scalar_lea.vmem %s28_s30, 256  ;;  %p1803_p4 = scmp.lt.s32.totalorder %s28_s30, %s28_s30 }
   0xa   :  { %p1799_p3 = scmp.ne.s32.totalorder %s28_s30, %s1798_s22  ;;  %p1804_p5 = scmp.lt.s32.totalorder %s1798_s22, %s1798_s22 }
   0xc   :  { %p1805_p6 = por %p1804_p5, %p1803_p4 }
   0xe   :  { %p1806_p7 = pnand %p1805_p6, %p1799_p3 }
  0x10   :  { %1809 = shalt.err (!%p1806_p7)
}
  0x11   :  { %s1861_s23 = smov 128   ;;  %s1862_s24 = smov 8  }
  0x12   :  { %33 = dma.hbm_to_vmem [thread:$0]  %s2202_s0, 256, %s28_s30, [#allocation3], %s1861_s23, %s1861_s23, %s1862_s24  }
  0x13   :  { %s1863_s27 = smov [#allocation5]   ;;  %s1810_s16 = scalar_lea.hbm %s2203_s1, 256 }
  0x14   :  { %s39_s28 = sshll.u32 %s1863_s27, 4  ;;  %p1811_p8 = scmp.ne.s32.totalorder %s2203_s1, %s1810_s16  ;;  %s40_s28 = int_to_ptr.vmem [resolvable:$true] %s39_s28 }
  0x15   :  { %p1814_p9 = scmp.lt.u32.totalorder %s1810_s16, %s2203_s1 }
  0x17   :  { %p1816_p10 = pnand %p1814_p9, %p1811_p8 }
  0x19   :  { %1819 = shalt.err (!%p1816_p10)
}
  0x1a   :  { %s1820_s21 = scalar_lea.vmem %s40_s28, 256  ;;  %p1825_p12 = scmp.lt.s32.totalorder %s40_s28, %s40_s28 }
  0x1b   :  { %p1821_p11 = scmp.ne.s32.totalorder %s40_s28, %s1820_s21  ;;  %p1826_p13 = scmp.lt.s32.totalorder %s1820_s21, %s1820_s21 }
  0x1d   :  { %p1827_p0 = por %p1826_p13, %p1825_p12 }
  0x1f   :  { %p1828_p1 = pnand %p1827_p0, %p1821_p11 }
  0x21   :  { %1831 = shalt.err (!%p1828_p1)
}
  0x22   :  { %45 = dma.hbm_to_vmem [thread:$0]  %s2203_s1, 256, %s40_s28, [#allocation6], %s1861_s23, %s1861_s23, %s1862_s24  }
  0x23   :  { %1854 = dma.done.wait [#allocation3], 256  }
  0x24   :  { %1855 = vsyncadd [#allocation3], 4294967040 }
  0x25   :  { %1856 = dma.done.wait [#allocation6], 256  }
  0x26   :  { %1857 = vsyncadd [#allocation6], 4294967040  ;;  %vm89_vm0 = vcmask 261120   ;;  %v78_v0 = vld [vmem:[%s2204_s2] sm:$0xff]  ;;  %v79_v1 = vld [vmem:[%s2204_s2 + $0x8] sm:$0xff]  ;;  %vm189_vm1 = vcmask 64512  }
  0x27   :  { %v80_v2 = vld [vmem:[%s2204_s2 + $0x10] sm:$0xff]  ;;  %v1616_v3 = vpack.c.bf16 %v79_v1, %v78_v0  ;;  %v81_v4 = vld [vmem:[%s2204_s2 + $0x18] sm:$0xff]  ;;  %v1989_v5 = vld [vmem:[#allocation2] sm:$0xff]  ;;  %s1864_s2 = smov 112   ;;  %s1865_s18 = smov 120   ;;  %vm534_vm3 = vcmask 130048  }
  0x28   :  { %v1620_v6 = vpack.c.bf16 %v81_v4, %v80_v2  ;;  %1516 = vmatprep.mubr.msk.f32.mxu1 %vm89_vm0, %v1989_v5  ;;  %v1993_v7 = vld [vmem:[#allocation2 + $0x8] sm:$0xff]  ;;  %v1408_v8 = vld [vmem:[%s2205_s3] ss:$0 sm:$0xff]  ;;  %s1866_s19 = smov 104   ;;  %s1867_s20 = smov 96   ;;  %vm2016_vm2 = vmpackc.low %vm189_vm1, %vm189_vm1  ;;  %vm1009_vm4 = vcmask 195584  }
  0x29   :  { %1617 = vmatprep.subr.bf16.mxu1 %v1616_v3  ;;  %s1868_s3 = smov 64   ;;  %v584_v62 = vld [vmem:[#allocation5 + $0x8] sm:$0xff]  ;;  %s1869_s15 = smov 16   ;;  %vm1260_vm5 = vcmask 523264  }
  0x2a   :  { %1619 = vmatpush3.bf16.msra.mxu1 %v1616_v3  ;;  %v2059_v3 = vld [vmem:[#allocation5] sm:$0xff]  ;;  %s1870_s16 = smov 24   ;;  %s1871_s30 = smov [#allocation7]  }
  0x2b   :  { %1621 = vmatprep.subr.bf16.mxu1 %v1620_v6  ;;  %s1395_s22 = sshll.u32 %s1871_s30, 4  ;;  %s1396_s22 = int_to_ptr.vmem [resolvable:$true] %s1395_s22 }
  0x2c   :  { %s1832_s25 = scalar_lea.vmem %s1396_s22, 256  ;;  %p1837_p3 = scmp.lt.s32.totalorder %s1396_s22, %s1396_s22 }
  0x2d   :  { %p1833_p2 = scmp.ne.s32.totalorder %s1396_s22, %s1832_s25  ;;  %p1838_p4 = scmp.lt.s32.totalorder %s1832_s25, %s1832_s25 }
  0x2e   :  { %1623 = vmatpush3.bf16.msra.mxu1 %v1620_v6 }
  0x2f   :  { %p1839_p5 = por %p1838_p4, %p1837_p3 }
  0x31   :  { %1517 = vmatmul.mubr.msk.f32.vlgmr.msra.gmra.mrb[0].mxu1 %vm89_vm0, %v1993_v7  ;;  %p1840_p6 = pnand %p1839_p5, %p1833_p2 }
 0x104   :  { %v1518_v9 = vpop.f32.mrb[0].mxu1 }
 0x105   :  { %v168_v10 = vadd.f32 %v1518_v9, %v1408_v8  ;;  %v162_v11 = vpop.f32.mrb[1].mxu1 }
 0x106   :  { %v163_v12 = vadd.f32 %v1408_v8, %v162_v11 }
 0x107   :  { %179 = vrot.lane.b32.xlu1 %v168_v10, %s1864_s2 }
 0x108   :  { %173 = vrot.lane.b32.xlu0 %v163_v12, %s1865_s18  ;;  %1523 = vmatprep.mubr.msk.f32.mxu1 %vm189_vm1, %v163_v12  ;;  %v2001_v13 = vpack.i.bf16 %v168_v10, %v163_v12 }
 0x10b   :  { %177 = vrot.lane.b32.xlu1 %v163_v12, %s1864_s2 }
 0x10c   :  { %175 = vrot.lane.b32.xlu0 %v168_v10, %s1865_s18 }
 0x10f   :  { %183 = vrot.lane.b32.xlu1 %v168_v10, %s1866_s19 }
 0x110   :  { %181 = vrot.lane.b32.xlu0 %v163_v12, %s1866_s19 }
 0x114   :  { %1709 = vrot.lane.b32.xlu0 %v2001_v13, %s1867_s20 }
 0x179   :  { %v180_v14 = vpop.permute.xlu1 %179 }
 0x17a   :  { %v174_v15 = vpop.permute.xlu0 %173 }
 0x17b   :  { %1530 = vmatprep.mubr.msk.f32.mxu0 %vm189_vm1, %v174_v15 }
 0x17d   :  { %v178_v16 = vpop.permute.xlu1 %177 }
 0x17e   :  { %v2005_v17 = vpack.i.bf16 %v180_v14, %v178_v16  ;;  %v176_v18 = vpop.permute.xlu0 %175 }
 0x17f   :  { %v2007_v19 = vpack.i.bf16 %v176_v18, %v174_v15 }
 0x180   :  { %1719 = vrot.lane.b32.xlu0 %v2005_v17, %s1867_s20 }
 0x181   :  { %v184_v20 = vpop.permute.xlu1 %183  ;;  %1714 = vrot.lane.b32.xlu1 %v2007_v19, %s1867_s20 }
 0x182   :  { %v182_v21 = vpop.permute.xlu0 %181 }
 0x183   :  { %v2011_v22 = vpack.i.bf16 %v184_v20, %v182_v21 }
 0x185   :  { %1724 = vrot.lane.b32.xlu1 %v2011_v22, %s1867_s20 }
 0x186   :  { %v1710_v23 = vpop.permute.xlu0 %1709 }
 0x187   :  { %v1712_v24 = vunpack.i.h.bf16 %v1710_v23  ;;  %v1711_v25 = vunpack.i.l.bf16 %v1710_v23 }
 0x189   :  { %v1624_v27 = vpack.c.bf16 %v1712_v24, %v1711_v25 }
 0x18b   :  { %1626 = vmatprep.subr.msk.bf16.mxu1 %vm2016_vm2, %v1624_v27 }
 0x18c   :  { %1629 = vmatpush3.bf16.xpose.msk.msra.mxu1 %vm2016_vm2, %v1624_v27 }
 0x193   :  { %1524 = vmatmul.mubr.msk.f32.vlgmr.msra.gmra.mrb[2].mxu1 %vm189_vm1, %v168_v10 }
 0x194   :  { %1537 = vmatprep.mubr.msk.f32.mxu1 %vm189_vm1, %v178_v16 }
 0x1f2   :  { %v1720_v28 = vpop.permute.xlu0 %1719 }
 0x1f3   :  { %v1722_v29 = vunpack.i.h.bf16 %v1720_v28  ;;  %v1721_v30 = vunpack.i.l.bf16 %v1720_v28  ;;  %v1715_v31 = vpop.permute.xlu1 %1714 }
 0x1f4   :  { %v1717_v32 = vunpack.i.h.bf16 %v1715_v31  ;;  %v1716_v33 = vunpack.i.l.bf16 %v1715_v31 }
 0x1f5   :  { %v1636_v34 = vpack.c.bf16 %v1722_v29, %v1721_v30 }
 0x1f6   :  { %v1630_v35 = vpack.c.bf16 %v1717_v32, %v1716_v33 }
 0x1f7   :  { %v1725_v36 = vpop.permute.xlu1 %1724  ;;  %1638 = vmatprep.subr.msk.bf16.mxu1 %vm2016_vm2, %v1636_v34 }
 0x1f8   :  { %v1727_v37 = vunpack.i.h.bf16 %v1725_v36  ;;  %v1726_v38 = vunpack.i.l.bf16 %v1725_v36  ;;  %1632 = vmatprep.subr.msk.bf16.mxu0 %vm2016_vm2, %v1630_v35  ;;  %1641 = vmatpush3.bf16.xpose.msk.msra.mxu1 %vm2016_vm2, %v1636_v34 }
 0x1f9   :  { %1635 = vmatpush3.bf16.xpose.msk.msra.mxu0 %vm2016_vm2, %v1630_v35 }
 0x1fa   :  { %v1642_v39 = vpack.c.bf16 %v1727_v37, %v1726_v38 }
 0x1fc   :  { %1644 = vmatprep.subr.msk.bf16.mxu0 %vm2016_vm2, %v1642_v39 }
 0x1ff   :  { %1538 = vmatmul.mubr.msk.f32.vlgmr.msra.gmra.mrb[4].mxu1 %vm189_vm1, %v180_v14 }
 0x200   :  { %1531 = vmatmul.mubr.msk.f32.vlgmr.msra.gmra.mrb[0].mxu0 %vm189_vm1, %v176_v18 }
 0x201   :  { %1647 = vmatpush3.bf16.xpose.msk.msra.mxu0 %vm2016_vm2, %v1642_v39  ;;  %1544 = vmatprep.mubr.msk.f32.mxu0 %vm189_vm1, %v182_v21 }
 0x208   :  { %1545 = vmatmul.mubr.msk.f32.vlgmr.msra.gmra.mrb[2].mxu0 %vm189_vm1, %v184_v20 }
 0x266   :  { %v1525_v40 = vpop.f32.mrb[2].mxu1 }
 0x267   :  { %v264_v41 = vpop.f32.mrb[3].mxu1  ;;  %v538_v42 = vsel %vm534_vm3, %v1525_v40, -inf }
 0x268   :  { %539 = vmax.xlane.f32.xlu1 %v538_v42  ;;  %v535_v43 = vsel %vm534_vm3, %v264_v41, -inf }
 0x269   :  { %536 = vmax.xlane.f32.xlu0 %v535_v43 }
 0x2d2   :  { %v1539_v44 = vpop.f32.mrb[4].mxu1 }
 0x2d3   :  { %v1532_v45 = vpop.f32.mrb[0].mxu0  ;;  %v438_v46 = vpop.f32.mrb[5].mxu1  ;;  %v550_v53 = vsel %vm534_vm3, %v1539_v44, -inf }
 0x2d4   :  { %v351_v47 = vpop.f32.mrb[1].mxu0  ;;  %v544_v48 = vsel %vm534_vm3, %v1532_v45, -inf  ;;  %v547_v49 = vsel %vm534_vm3, %v438_v46, -inf }
 0x2d5   :  { %545 = vmax.xlane.f32.xlu0 %v544_v48  ;;  %548 = vmax.xlane.f32.xlu1 %v547_v49  ;;  %v541_v50 = vsel %vm534_vm3, %v351_v47, -inf }
 0x2d9   :  { %542 = vmax.xlane.f32.xlu0 %v541_v50 }
 0x2db   :  { %v1546_v51 = vpop.f32.mrb[2].mxu0 }
 0x2dc   :  { %v2047_v52 = vpop.f32.mrb[3].mxu0  ;;  %v556_v55 = vsel %vm534_vm3, %v1546_v51, -inf }
 0x2dd   :  { %551 = vmax.xlane.f32.xlu0 %v550_v53  ;;  %v553_v54 = vsel %vm534_vm3, %v2047_v52, -inf }
 0x2de   :  { %554 = vmax.xlane.f32.xlu1 %v553_v54 }
 0x2e1   :  { %557 = vmax.xlane.f32.xlu0 %v556_v55 }
 0x2ef   :  { %1729 = vrot.lane.b32.xlu1 %v2001_v13, %s1868_s3 }
 0x2f5   :  { %v540_v56 = vpop.xlane.xlu1 %539 }
 0x2f6   :  { %v560_v57 = vsub.f32 %v1525_v40, %v540_v56  ;;  %v537_v58 = vpop.xlane.xlu0 %536 }
 0x2f7   :  { %v559_v60 = vsub.f32 %v264_v41, %v537_v58 }
 0x2f8   :  { %v569_v59 = vmul.f32 1.442695, %v560_v57 }
 0x2f9   :  { %v567_v61 = vmul.f32 1.442695, %v559_v60 }
 0x2fa   :  { %1748 = vpow2.f32 %v569_v59 }
 0x2fb   :  { %1750 = vpow2.f32 %v567_v61 }
 0x304   :  { %v1749_v63 = vpop.eup %1748 }
 0x305   :  { %v2055_v0 = vmul.f32 %v1749_v63, %v584_v62  ;;  %v1751_v2 = vpop.eup %1750 }
 0x306   :  { %v585_v4 = vmul.f32 %v1751_v2, %v2059_v3 }
 0x307   :  { %v596_v1 = vsel %vm534_vm3, %v2055_v0, 0.0 }
 0x308   :  { %597 = vadd.xlane.f32.xlu0 %v596_v1  ;;  %v593_v6 = vsel %vm534_vm3, %v585_v4, 0.0 }
 0x313   :  { %594 = vadd.xlane.f32.xlu1 %v593_v6 }
 0x362   :  { %v546_v8 = vpop.xlane.xlu0 %545  ;;  %v549_v9 = vpop.xlane.xlu1 %548 }
 0x363   :  { %v562_v10 = vsub.f32 %v1532_v45, %v546_v8  ;;  %v563_v11 = vsub.f32 %v438_v46, %v549_v9 }
 0x365   :  { %v573_v12 = vmul.f32 1.442695, %v562_v10  ;;  %v575_v13 = vmul.f32 1.442695, %v563_v11 }
 0x366   :  { %v543_v14 = vpop.xlane.xlu0 %542 }
 0x367   :  { %1752 = vpow2.f32 %v573_v12  ;;  %v561_v15 = vsub.f32 %v351_v47, %v543_v14 }
 0x368   :  { %1754 = vpow2.f32 %v575_v13 }
 0x369   :  { %v571_v16 = vmul.f32 1.442695, %v561_v15 }
 0x36a   :  { %v552_v18 = vpop.xlane.xlu0 %551 }
 0x36b   :  { %1756 = vpow2.f32 %v571_v16  ;;  %v564_v20 = vsub.f32 %v1539_v44, %v552_v18  ;;  %v555_v21 = vpop.xlane.xlu1 %554 }
 0x36c   :  { %v565_v46 = vsub.f32 %v2047_v52, %v555_v21 }
 0x36d   :  { %v577_v23 = vmul.f32 1.442695, %v564_v20 }
 0x36e   :  { %v558_v24 = vpop.xlane.xlu0 %557  ;;  %v579_v47 = vmul.f32 1.442695, %v565_v46 }
 0x36f   :  { %1758 = vpow2.f32 %v577_v23  ;;  %v566_v25 = vsub.f32 %v1546_v51, %v558_v24  ;;  %v1730_v26 = vpop.permute.xlu1 %1729 }
 0x370   :  { %v1732_v27 = vunpack.i.h.bf16 %v1730_v26  ;;  %v1731_v28 = vunpack.i.l.bf16 %v1730_v26 }
 0x371   :  { %v1753_v29 = vpop.eup %1752  ;;  %v581_v30 = vmul.f32 1.442695, %v566_v25 }
 0x372   :  { %v1648_v31 = vpack.c.bf16 %v1732_v27, %v1731_v28  ;;  %v2063_v32 = vmul.f32 %v1753_v29, %v584_v62  ;;  %v1755_v33 = vpop.eup %1754  ;;  %v1012_v27 = vld [vmem:[%s2206_s4] sm:$0xff]  ;;  %v1013_v28 = vld [vmem:[%s2206_s4 + $0x8] sm:$0xff]  ;;  %v1014_v29 = vld [vmem:[%s2206_s4 + $0x10] sm:$0xff] }
 0x373   :  { %1760 = vpow2.f32 %v581_v30  ;;  %v589_v38 = vmul.f32 %v1755_v33, %v2059_v3  ;;  %v1664_v30 = vpack.c.bf16 %v1013_v28, %v1012_v27  ;;  %v1438_v28 = vld [vmem:[%s2212_s10] ss:$0 sm:$0xff] }
 0x374   :  { %1649 = vmatprep.subr.bf16.mxu1 %v1648_v31  ;;  %v602_v34 = vsel %vm534_vm3, %v2063_v32, 0.0  ;;  %1762 = vpow2.f32 %v579_v47 }
 0x375   :  { %v1757_v35 = vpop.eup %1756  ;;  %603 = vadd.xlane.f32.xlu0 %v602_v34  ;;  %1651 = vmatpush3.bf16.msra.mxu1 %v1648_v31  ;;  %v605_v42 = vsel %vm534_vm3, %v589_v38, 0.0  ;;  %v1015_v31 = vld [vmem:[%s2206_s4 + $0x18] sm:$0xff] }
 0x376   :  { %v587_v36 = vmul.f32 %v1757_v35, %v2059_v3 }
 0x378   :  { %v599_v37 = vsel %vm534_vm3, %v587_v36, 0.0 }
 0x379   :  { %v1759_v39 = vpop.eup %1758  ;;  %600 = vadd.xlane.f32.xlu1 %v599_v37 }
 0x37a   :  { %v590_v40 = vmul.f32 %v1759_v39, %v584_v62 }
 0x37c   :  { %v608_v41 = vsel %vm534_vm3, %v590_v40, 0.0 }
 0x37d   :  { %v1761_v43 = vpop.eup %1760  ;;  %609 = vadd.xlane.f32.xlu0 %v608_v41  ;;  %606 = vadd.xlane.f32.xlu1 %v605_v42 }
 0x37e   :  { %v2072_v44 = vmul.f32 %v1761_v43, %v584_v62  ;;  %v1763_v50 = vpop.eup %1762 }
 0x37f   :  { %v591_v56 = vmul.f32 %v1763_v50, %v2059_v3 }
 0x380   :  { %v614_v45 = vsel %vm534_vm3, %v2072_v44, 0.0 }
 0x381   :  { %615 = vadd.xlane.f32.xlu0 %v614_v45 }
 0x38e   :  { %1739 = vrot.lane.b32.xlu1 %v2005_v17, %s1868_s3  ;;  %v611_v17 = vsel %vm534_vm3, %v591_v56, 0.0 }
 0x395   :  { %v598_v48 = vpop.xlane.xlu0 %597 }
 0x396   :  { %1764 = vrcp.f32 %v598_v48 }
 0x397   :  { %1734 = vrot.lane.b32.xlu0 %v2007_v19, %s1868_s3 }
 0x3a0   :  { %v595_v49 = vpop.xlane.xlu1 %594  ;;  %v1765_v51 = vpop.eup %1764 }
 0x3a1   :  { %1766 = vrcp.f32 %v595_v49  ;;  %v620_v55 = vmul.f32 %v1765_v51, %v2055_v0  ;;  %v1435_v51 = vld [vmem:[%s2207_s5] ss:$0 sm:$0xff] }
 0x3ab   :  { %v1767_v53 = vpop.eup %1766 }
 0x3ac   :  { %v618_v54 = vmul.f32 %v1767_v53, %v585_v4 }
 0x3ae   :  { %1551 = vmatprep.mubr.msk.f32.mxu1 %vm534_vm3, %v618_v54 }
 0x3af   :  { %1552 = vmatmul.mubr.msk.f32.vlgmr.msra.gmra.mrb[6].mxu1 %vm534_vm3, %v620_v55 }
 0x3b2   :  { %612 = vadd.xlane.f32.xlu1 %v611_v17 }
 0x3c3   :  { %1744 = vrot.lane.b32.xlu1 %v2011_v22, %s1868_s3 }
 0x402   :  { %v604_v19 = vpop.xlane.xlu0 %603 }
 0x406   :  { %v601_v52 = vpop.xlane.xlu1 %600 }
 0x407   :  { %1768 = vrcp.f32 %v601_v52 }
 0x408   :  { %1770 = vrcp.f32 %v604_v19 }
 0x40a   :  { %v610_v57 = vpop.xlane.xlu0 %609  ;;  %v607_v58 = vpop.xlane.xlu1 %606 }
 0x40b   :  { %1772 = vrcp.f32 %v610_v57 }
 0x40c   :  { %1774 = vrcp.f32 %v607_v58 }
 0x40e   :  { %v616_v59 = vpop.xlane.xlu0 %615  ;;  %v1740_v60 = vpop.permute.xlu1 %1739 }
 0x40f   :  { %v1742_v61 = vunpack.i.h.bf16 %v1740_v60  ;;  %v1741_v62 = vunpack.i.l.bf16 %v1740_v60  ;;  %1776 = vrcp.f32 %v616_v59 }
 0x411   :  { %v1769_v63 = vpop.eup %1768  ;;  %v1656_v0 = vpack.c.bf16 %v1742_v61, %v1741_v62 }
 0x412   :  { %v1735_v1 = vpop.permute.xlu0 %1734  ;;  %v622_v2 = vmul.f32 %v1769_v63, %v587_v36  ;;  %v1771_v22 = vpop.eup %1770 }
 0x413   :  { %v1737_v3 = vunpack.i.h.bf16 %v1735_v1  ;;  %v1736_v4 = vunpack.i.l.bf16 %v1735_v1  ;;  %1657 = vmatprep.subr.bf16.mxu0 %v1656_v0  ;;  %v624_v12 = vmul.f32 %v1771_v22, %v2063_v32  ;;  %v1668_v32 = vpack.c.bf16 %v1015_v31, %v1014_v29  ;;  %v1153_v22 = vld [vmem:[%s2208_s6 + $0x10] sm:$0xff] }
 0x414   :  { %1558 = vmatprep.mubr.msk.f32.mxu1 %vm534_vm3, %v622_v2  ;;  %1659 = vmatpush3.bf16.msra.mxu0 %v1656_v0 }
 0x415   :  { %v1773_v6 = vpop.eup %1772  ;;  %v1652_v8 = vpack.c.bf16 %v1737_v3, %v1736_v4  ;;  %1665 = vmatprep.subr.bf16.mxu0 %v1664_v30  ;;  %v1152_v3 = vld [vmem:[%s2208_s6 + $0x8] sm:$0xff] }
 0x416   :  { %v1775_v9 = vpop.eup %1774  ;;  %v628_v10 = vmul.f32 %v1773_v6, %v590_v40  ;;  %v1154_v6 = vld [vmem:[%s2208_s6 + $0x18] sm:$0xff] }
 0x417   :  { %1653 = vmatprep.subr.bf16.mxu1 %v1652_v8  ;;  %v626_v11 = vmul.f32 %v1775_v9, %v589_v38  ;;  %v1245_v9 = vld [vmem:[%s2210_s8] sm:$0xff] }
 0x418   :  { %1655 = vmatpush3.bf16.msra.mxu1 %v1652_v8  ;;  %v1676_v8 = vpack.c.bf16 %v1154_v6, %v1153_v22  ;;  %v1446_v22 = vld [vmem:[%s2214_s12] ss:$0 sm:$0xff] }
 0x419   :  { %1565 = vmatprep.mubr.msk.f32.mxu0 %vm534_vm3, %v626_v11  ;;  %v1777_v20 = vpop.eup %1776  ;;  %v1247_v11 = vld [vmem:[%s2210_s8 + $0x10] sm:$0xff] }
 0x41a   :  { %1566 = vmatmul.mubr.msk.f32.vlgmr.msra.gmra.mrb[4].mxu0 %vm534_vm3, %v628_v10  ;;  %v632_v24 = vmul.f32 %v1777_v20, %v2072_v44  ;;  %v1246_v10 = vld [vmem:[%s2210_s8 + $0x8] sm:$0xff] }
 0x41b   :  { %1559 = vmatmul.mubr.msk.f32.vlgmr.msra.gmra.mrb[8].mxu1 %vm534_vm3, %v624_v12  ;;  %1667 = vmatpush3.bf16.msra.mxu0 %v1664_v30  ;;  %v1680_v12 = vpack.c.bf16 %v1246_v10, %v1245_v9  ;;  %v1439_v30 = vld [vmem:[%s2213_s11] ss:$0 sm:$0xff] }
 0x41c   :  { %1669 = vmatprep.subr.bf16.mxu0 %v1668_v32  ;;  %v1447_v10 = vld [vmem:[%s2215_s13] ss:$0 sm:$0xff] }
 0x41f   :  { %1671 = vmatpush3.bf16.msra.mxu0 %v1668_v32 }
 0x420   :  { %1681 = vmatprep.subr.bf16.mxu0 %v1680_v12 }
 0x43f   :  { %v613_v13 = vpop.xlane.xlu1 %612 }
 0x440   :  { %1778 = vrcp.f32 %v613_v13  ;;  %v1248_v13 = vld [vmem:[%s2210_s8 + $0x18] sm:$0xff] }
 0x443   :  { %v1745_v14 = vpop.permute.xlu1 %1744 }
 0x444   :  { %v1747_v15 = vunpack.i.h.bf16 %v1745_v14  ;;  %v1746_v16 = vunpack.i.l.bf16 %v1745_v14  ;;  %v1684_v14 = vpack.c.bf16 %v1248_v13, %v1247_v11 }
 0x446   :  { %v1660_v18 = vpack.c.bf16 %v1747_v15, %v1746_v16  ;;  %v1249_v15 = vld [vmem:[%s2210_s8 + $0x20] sm:$0xff]  ;;  %v1250_v16 = vld [vmem:[%s2210_s8 + $0x28] sm:$0xff] }
 0x448   :  { %1661 = vmatprep.subr.bf16.mxu1 %v1660_v18 }
 0x449   :  { %1663 = vmatpush3.bf16.msra.mxu1 %v1660_v18  ;;  %v1688_v18 = vpack.c.bf16 %v1250_v16, %v1249_v15 }
 0x44a   :  { %v1779_v21 = vpop.eup %1778 }
 0x44b   :  { %v630_v23 = vmul.f32 %v1779_v21, %v591_v56 }
 0x44d   :  { %1572 = vmatprep.mubr.msk.f32.mxu1 %vm534_vm3, %v630_v23 }
 0x44e   :  { %1573 = vmatmul.mubr.msk.f32.vlgmr.msra.gmra.mrb[10].mxu1 %vm534_vm3, %v632_v24 }
 0x482   :  { %v1553_v25 = vpop.f32.mrb[6].mxu1 }
 0x483   :  { %v711_v26 = vpop.f32.mrb[7].mxu1 }
 0x4ed   :  { %v1567_v33 = vpop.f32.mrb[4].mxu0 }
 0x4ee   :  { %v885_v34 = vpop.f32.mrb[5].mxu0  ;;  %v1560_v35 = vpop.f32.mrb[8].mxu1 }
 0x4ef   :  { %985 = vrot.lane.b32.xlu1 %v1560_v35, %s1862_s24  ;;  %v798_v36 = vpop.f32.mrb[9].mxu1 }
 0x4f0   :  { %983 = vrot.lane.b32.xlu0 %v798_v36, %s1862_s24 }
 0x4f3   :  { %993 = vrot.lane.b32.xlu1 %v1567_v33, %s1869_s15 }
 0x4f4   :  { %991 = vrot.lane.b32.xlu0 %v885_v34, %s1869_s15 }
 0x521   :  { %v1574_v37 = vpop.f32.mrb[10].mxu1 }
 0x522   :  { %1001 = vrot.lane.b32.xlu1 %v1574_v37, %s1870_s16  ;;  %v972_v38 = vpop.f32.mrb[11].mxu1  ;;  %v1251_v37 = vld [vmem:[%s2210_s8 + $0x30] sm:$0xff] }
 0x523   :  { %999 = vrot.lane.b32.xlu0 %v972_v38, %s1870_s16  ;;  %v1252_v38 = vld [vmem:[%s2210_s8 + $0x38] sm:$0xff] }
 0x561   :  { %v986_v39 = vpop.permute.xlu1 %985 }
 0x562   :  { %v984_v40 = vpop.permute.xlu0 %983  ;;  %v1006_v45 = vsel %vm189_vm1, %v1553_v25, %v986_v39  ;;  %v1692_v39 = vpack.c.bf16 %v1252_v38, %v1251_v37 }
 0x563   :  { %v1005_v43 = vsel %vm189_vm1, %v711_v26, %v984_v40  ;;  %v1440_v40 = vld [vmem:[%s2209_s7] ss:$0 sm:$0xff] }
 0x565   :  { %v994_v41 = vpop.permute.xlu1 %993 }
 0x566   :  { %v992_v42 = vpop.permute.xlu0 %991  ;;  %v1008_v48 = vsel %vm534_vm3, %v1006_v45, %v994_v41 }
 0x567   :  { %v1007_v46 = vsel %vm534_vm3, %v1005_v43, %v992_v42 }
 0x594   :  { %v1002_v44 = vpop.permute.xlu1 %1001 }
 0x595   :  { %v1000_v47 = vpop.permute.xlu0 %999  ;;  %v1011_v50 = vsel %vm1009_vm4, %v1008_v48, %v1002_v44 }
 0x596   :  { %v1010_v49 = vsel %vm1009_vm4, %v1007_v46, %v1000_v47  ;;  %v1443_v47 = vld [vmem:[%s2211_s9] ss:$0 sm:$0xff] }
 0x597   :  { %1583 = vmatprep.mubr.msk.f32.mxu0 %vm89_vm0, %v1010_v49 }
 0x598   :  { %1584 = vmatmul.mubr.msk.f32.vlgmr.msra.gmra.mrb[6].mxu0 %vm89_vm0, %v1011_v50 }
 0x599   :  { %1683 = vmatpush3.bf16.msra.mxu0 %v1680_v12 }
 0x59a   :  { %1685 = vmatprep.subr.bf16.mxu0 %v1684_v14 }
 0x59d   :  { %1687 = vmatpush3.bf16.msra.mxu0 %v1684_v14 }
 0x59e   :  { %1689 = vmatprep.subr.bf16.mxu0 %v1688_v18 }
 0x5a1   :  { %1691 = vmatpush3.bf16.msra.mxu0 %v1688_v18 }
 0x5a2   :  { %1693 = vmatprep.subr.bf16.mxu0 %v1692_v39 }
 0x5a5   :  { %1695 = vmatpush3.bf16.msra.mxu0 %v1692_v39 }
 0x66b   :  { %v1585_v53 = vpop.f32.mrb[6].mxu0 }
 0x66c   :  { %v1101_v54 = vadd.f32 %v1585_v53, %v1435_v51  ;;  %v1095_v55 = vpop.f32.mrb[7].mxu0 }
 0x66d   :  { %v1096_v56 = vadd.f32 %v1435_v51, %v1095_v55 }
 0x66e   :  { %v1105_v17 = vadd.f32 %v1101_v54, %v1993_v7 }
 0x66f   :  { %v1104_v19 = vadd.f32 %v1096_v56, %v1989_v5  ;;  %v1151_v5 = vld [vmem:[%s2208_s6] sm:$0xff] }
 0x670   :  { %v1111_v52 = vsel %vm89_vm0, %v1105_v17, 0.0  ;;  %v1672_v4 = vpack.c.bf16 %v1152_v3, %v1151_v5 }
 0x671   :  { %1112 = vadd.xlane.f32.xlu1 %v1111_v52  ;;  %v1108_v57 = vsel %vm89_vm0, %v1104_v19, 0.0 }
 0x672   :  { %1109 = vadd.xlane.f32.xlu0 %v1108_v57  ;;  %1673 = vmatprep.subr.bf16.mxu1 %v1672_v4 }
 0x673   :  { %1675 = vmatpush3.bf16.msra.mxu1 %v1672_v4 }
 0x674   :  { %1677 = vmatprep.subr.bf16.mxu1 %v1676_v8 }
 0x677   :  { %1679 = vmatpush3.bf16.msra.mxu1 %v1676_v8 }
 0x6fe   :  { %v1113_v58 = vpop.xlane.xlu1 %1112 }
 0x6ff   :  { %v1116_v59 = vmul.f32 0.03125, %v1113_v58  ;;  %v1110_v60 = vpop.xlane.xlu0 %1109 }
 0x700   :  { %v1115_v61 = vmul.f32 0.03125, %v1110_v60 }
 0x701   :  { %v1118_v62 = vsub.f32 %v1105_v17, %v1116_v59 }
 0x702   :  { %v1117_v63 = vsub.f32 %v1104_v19, %v1115_v61 }
 0x703   :  { %v1120_v2 = vmul.f32 %v1118_v62, %v1118_v62 }
 0x704   :  { %v1119_v0 = vmul.f32 %v1117_v63, %v1117_v63 }
 0x705   :  { %v1124_v7 = vsel %vm89_vm0, %v1120_v2, 0.0 }
 0x706   :  { %v1121_v1 = vsel %vm89_vm0, %v1119_v0, 0.0 }
 0x707   :  { %1122 = vadd.xlane.f32.xlu0 %v1121_v1 }
 0x70b   :  { %1125 = vadd.xlane.f32.xlu0 %v1124_v7 }
 0x794   :  { %v1123_v20 = vpop.xlane.xlu0 %1122 }
 0x795   :  { %v1127_v21 = vmul.f32 0.03125, %v1123_v20 }
 0x797   :  { %v1129_v23 = vadd.f32 1e-05, %v1127_v21 }
 0x798   :  { %v1126_v24 = vpop.xlane.xlu0 %1125 }
 0x799   :  { %1780 = vrsqrt.f32 %v1129_v23  ;;  %v1128_v25 = vmul.f32 0.03125, %v1126_v24 }
 0x79b   :  { %v1130_v26 = vadd.f32 1e-05, %v1128_v25 }
 0x79d   :  { %1782 = vrsqrt.f32 %v1130_v26 }
 0x7a3   :  { %v1781_v27 = vpop.eup %1780 }
 0x7a4   :  { %v1133_v29 = vmul.f32 %v1781_v27, %v1117_v63 }
 0x7a6   :  { %v1141_v31 = vmul.f32 %v1438_v28, %v1133_v29 }
 0x7a7   :  { %v1783_v32 = vpop.eup %1782 }
 0x7a8   :  { %v1134_v33 = vmul.f32 %v1783_v32, %v1118_v62  ;;  %v1149_v34 = vadd.f32 %v1439_v30, %v1141_v31 }
 0x7aa   :  { %v1142_v35 = vmul.f32 %v1438_v28, %v1134_v33  ;;  %1594 = vmatprep.mubr.msk.f32.mxu1 %vm89_vm0, %v1149_v34 }
 0x7ac   :  { %v1150_v36 = vadd.f32 %v1439_v30, %v1142_v35 }
 0x7ae   :  { %1595 = vmatmul.mubr.msk.f32.vlgmr.msra.gmra.mrb[12].mxu1 %vm89_vm0, %v1150_v36 }
 0x881   :  { %v1596_v41 = vpop.f32.mrb[12].mxu1 }
 0x882   :  { %v1240_v42 = vadd.f32 %v1596_v41, %v1440_v40  ;;  %v1234_v43 = vpop.f32.mrb[13].mxu1 }
 0x883   :  { %v1235_v44 = vadd.f32 %v1440_v40, %v1234_v43 }
 0x884   :  { %v1244_v46 = vmax.f32 %v1240_v42, 0.0 }
 0x885   :  { %v1243_v45 = vmax.f32 %v1235_v44, 0.0 }
 0x887   :  { %1613 = vmatprep.mubr.msk.f32.mxu0 %vm1260_vm5, %v1243_v45 }
 0x888   :  { %1614 = vmatmul.mubr.msk.f32.vlgmr.msra.gmra.mrb[8].mxu0 %vm1260_vm5, %v1244_v46 }
 0x95b   :  { %v1615_v48 = vpop.f32.mrb[8].mxu0 }
 0x95c   :  { %v1339_v49 = vadd.f32 %v1615_v48, %v1443_v47  ;;  %v1333_v50 = vpop.f32.mrb[9].mxu0 }
 0x95d   :  { %v1334_v51 = vadd.f32 %v1443_v47, %v1333_v50 }
 0x95e   :  { %v1343_v53 = vadd.f32 %v1339_v49, %v1150_v36 }
 0x95f   :  { %v1342_v54 = vadd.f32 %v1334_v51, %v1149_v34 }
 0x960   :  { %v1349_v55 = vsel %vm89_vm0, %v1343_v53, 0.0 }
 0x961   :  { %1350 = vadd.xlane.f32.xlu0 %v1349_v55  ;;  %v1346_v56 = vsel %vm89_vm0, %v1342_v54, 0.0 }
 0x962   :  { %1347 = vadd.xlane.f32.xlu1 %v1346_v56 }
 0x9ee   :  { %v1351_v17 = vpop.xlane.xlu0 %1350 }
 0x9ef   :  { %v1353_v19 = vmul.f32 0.03125, %v1351_v17  ;;  %v1348_v52 = vpop.xlane.xlu1 %1347 }
 0x9f0   :  { %v1352_v57 = vmul.f32 0.03125, %v1348_v52 }
 0x9f1   :  { %v1355_v58 = vsub.f32 %v1343_v53, %v1353_v19 }
 0x9f2   :  { %v1354_v59 = vsub.f32 %v1342_v54, %v1352_v57 }
 0x9f3   :  { %v1357_v60 = vmul.f32 %v1355_v58, %v1355_v58 }
 0x9f4   :  { %v1356_v61 = vmul.f32 %v1354_v59, %v1354_v59 }
 0x9f5   :  { %v1361_v62 = vsel %vm89_vm0, %v1357_v60, 0.0 }
 0x9f6   :  { %1362 = vadd.xlane.f32.xlu0 %v1361_v62  ;;  %v1358_v63 = vsel %vm89_vm0, %v1356_v61, 0.0 }
 0x9f7   :  { %1359 = vadd.xlane.f32.xlu1 %v1358_v63 }
 0xa83   :  { %v1363_v0 = vpop.xlane.xlu0 %1362 }
 0xa84   :  { %v1365_v1 = vmul.f32 0.03125, %v1363_v0  ;;  %v1360_v2 = vpop.xlane.xlu1 %1359 }
 0xa85   :  { %v1364_v7 = vmul.f32 0.03125, %v1360_v2 }
 0xa86   :  { %v1367_v5 = vadd.f32 1e-05, %v1365_v1 }
 0xa87   :  { %v1366_v3 = vadd.f32 1e-05, %v1364_v7 }
 0xa88   :  { %1784 = vrsqrt.f32 %v1367_v5 }
 0xa89   :  { %1786 = vrsqrt.f32 %v1366_v3 }
 0xa92   :  { %v1785_v4 = vpop.eup %1784 }
 0xa93   :  { %v1787_v6 = vpop.eup %1786  ;;  %v1371_v8 = vmul.f32 %v1785_v4, %v1355_v58 }
 0xa94   :  { %v1370_v9 = vmul.f32 %v1787_v6, %v1354_v59 }
 0xa95   :  { %v1379_v11 = vmul.f32 %v1446_v22, %v1371_v8 }
 0xa96   :  { %v1378_v12 = vmul.f32 %v1446_v22, %v1370_v9 }
 0xa97   :  { %v1387_v13 = vadd.f32 %v1447_v10, %v1379_v11 }
 0xa98   :  { %v1386_v14 = vadd.f32 %v1447_v10, %v1378_v12 }
 0xa99   :  { %1389 = vst.msk [vmem:[#allocation7 + $0x8] sm:$0xff] %vm89_vm0, %v1387_v13 }
 0xa9a   :  { %1388 = vst.msk [vmem:[#allocation7] sm:$0xff] %vm89_vm0, %v1386_v14 }
 0xa9b   :  { %1843 = shalt.err (!%p1840_p6)
}
 0xa9c   :  { %s1844_s26 = scalar_lea.hbm %s2216_s14, 256 }
 0xa9d   :  { %p1845_p7 = scmp.ne.s32.totalorder %s2216_s14, %s1844_s26  ;;  %p1848_p8 = scmp.lt.u32.totalorder %s1844_s26, %s2216_s14 }
 0xa9f   :  { %p1850_p9 = pnand %p1848_p8, %p1845_p7 }
 0xaa1   :  { %1853 = shalt.err (!%p1850_p9)
}
 0xaa2   :  { %1401 = dma.vmem_to_hbm [thread:$0]  %s1396_s22, 256, %s2216_s14, [#allocation4], %s1861_s23, %s1861_s23, %s1862_s24  }
 0xaa3   :  { %1858 = dma.done.wait [#allocation4], 256  }
 0xaa4   :  { %1859 = vsyncadd [#allocation4], 4294967040 }
 0xaa5   :  { %1405 = vsyncpa [#allocation3], 1 }
 0xaa6   :  { %1406 = vsyncpa [#allocation6], 1 }
 0xaa7   :  { %1407 = vsyncpa [#allocation4], 1 }

</bundles_post_ra>
